<compile_context>
chip_gen: v7x
topology: tpu7x:2x2x1
jax: 0.10.0
libtpu: 0.0.40
codegen_flags: <defaults>
</compile_context>

<pallas_src>
import functools
import math

import jax
import jax.numpy as jnp
from jax.experimental import pallas as pl
from jax.experimental.pallas import tpu as pltpu


def _round_up(x: int, m: int) -> int:
    return ((x + m - 1) // m) * m


def _mean_pool_kernel(x_ref, o_ref, acc_ref, *, inv_scale, t_rem):
    """Streaming sum over the T (sublane) axis of each block.

    x_ref:   (TB, TT, CK)  input tile in VMEM
    o_ref:   (1, TB, CK)   output tile (resident across the T grid axis)
    acc_ref: (TB, CK)      f32 accumulator scratch
    inv_scale: python float -> scale+cast in-kernel; None -> emit raw f32 sums
    t_rem:   valid rows in the globally-last T block (0 = block is full)
    """
    t = pl.program_id(2)
    nt = pl.num_programs(2)

    x = x_ref[...].astype(jnp.float32)

    if t_rem:  # static: only the globally-last T block is ragged -> mask garbage rows
        s = pl.program_id(0)
        is_last_global = jnp.logical_and(s == pl.num_programs(0) - 1, t == nt - 1)
        valid = jnp.where(is_last_global, t_rem, x.shape[1])
        row = jax.lax.broadcasted_iota(jnp.int32, (1, x.shape[1], 1), 1)
        x = jnp.where(row < valid, x, 0.0)

    blk_sum = jnp.sum(x, axis=1)  # (TB, CK), f32

    @pl.when(t == 0)
    def _():
        acc_ref[...] = blk_sum

    @pl.when(t > 0)
    def _():
        acc_ref[...] += blk_sum

    @pl.when(t == nt - 1)
    def _():
        acc = acc_ref[...]
        if inv_scale is not None:
            acc = acc * inv_scale
        o_ref[...] = acc.astype(o_ref.dtype)[None]


def _default_block_bytes() -> int:
    try:
        kind = jax.devices()[0].device_kind.lower()
    except Exception:
        kind = ""
    if "v5 lite" in kind or "v5e" in kind or "v5lite" in kind:
        return 3 << 20   # v5e: ~0.8 TB/s HBM; VMEM (not step overhead) is the risk
    if "v6" in kind or "trillium" in kind:
        return 8 << 20   # v6e: ~1.4 TB/s
    if "v7" in kind:
        return 14 << 20  # v7x: 3.2 TB/s -> bigger blocks to amortize ~0.35us/step
    return 6 << 20


def _is_v7() -> bool:
    try:
        return "v7" in jax.devices()[0].device_kind.lower()
    except Exception:
        return False


@functools.partial(jax.jit, static_argnames=("target_block_bytes", "split_reduction"))
def fcn_base_forward(features, *, target_block_bytes=None, split_reduction=None):
    """Pallas TPU implementation of FCN_base.forward (mean over the sequence axis).

    features: (B, T, C) float array.
    returns:  jnp.squeeze(mean over T): (B, C), or (C,) when B == 1 — matching
              torch's `.squeeze()` on the pooled (B, C, 1) tensor.
    """
    B, T, C = features.shape
    orig_dtype = features.dtype
    itemsize = jnp.dtype(orig_dtype).itemsize
    sub = {4: 8, 2: 16, 1: 32}.get(itemsize, 8)      # sublane tile for this dtype

    if target_block_bytes is None:
        target_block_bytes = _default_block_bytes()

    # ---- Lane-dense layout for narrow C: (B,T,C) -> (B, T/g, g*C) with g*C a
    #      multiple of 128 so no vreg lanes / VMEM rows are wasted.  Zero-copy
    #      (pure bitcast) since it is only taken when T % g == 0: no pad, no extra
    #      HBM pass.  The g-group fold happens in the tiny epilogue below.
    groups = 1
    if C < 128:
        g = 128 // math.gcd(C, 128)
        if T % g == 0:
            while T % (2 * g) == 0 and 2 * g * C <= 512:
                g *= 2
            groups = g
    x = features if groups == 1 else features.reshape(B, T // groups, groups * C)
    t_rows = T // groups
    ck = groups * C
    padded_ck = _round_up(ck, 128)                   # lane dim as it sits in VMEM

    # ---- Batch tiling (output sublane dim): multiple of 8, or the full B.
    if B <= 8:
        tb = B
    else:
        bytes_per_batch_row = _round_up(t_rows, sub) * padded_ck * itemsize
        if bytes_per_batch_row * 8 >= target_block_bytes:
            tb = 8
        else:                                        # tiny T*C: widen the batch tile
            tb = min(_round_up(B, 8),
                     max(8, (target_block_bytes // bytes_per_batch_row) // 8 * 8))

    # ---- Sequence tiling sized by the *VMEM* footprint (lane padded to 128).
    tt_cap = max(sub, (target_block_bytes // (tb * padded_ck * itemsize)) // sub * sub)
    tt = t_rows if t_rows <= tt_cap else tt_cap
    nb = pl.cdiv(B, tb)
    nt_total = pl.cdiv(t_rows, tt)
    rem = t_rows - (nt_total - 1) * tt
    t_rem = 0 if rem == tt else rem                  # valid rows in the last T block

    # ---- Optional 2-way "parallel" split of the reduction so both TensorCores of a
    #      v7x chip stay busy when the batch fits a single block.
    if split_reduction is None:
        split_reduction = _is_v7()
    use_split = bool(split_reduction) and nb == 1 and nt_total >= 4 and nt_total % 2 == 0
    n_splits = 2 if use_split else 1
    nt = nt_total // n_splits

    needs_epilogue = use_split or groups > 1
    if needs_epilogue:                               # fold / combine + scale in wrapper
        out_dtype, inv_scale = jnp.float32, None
    else:                                            # scale + cast in-kernel
        out_dtype, inv_scale = orig_dtype, 1.0 / T

    # ---- Explicit VMEM budget: double-buffered input block + output + scratch.
    in_block_vmem = tb * _round_up(tt, sub) * padded_ck * itemsize
    aux_vmem = (_round_up(tb, 8) * padded_ck * 4
                + 2 * _round_up(tb, 8) * padded_ck * jnp.dtype(out_dtype).itemsize)
    vmem_limit = int(min(48 << 20, max(32 << 20, 2 * in_block_vmem + aux_vmem + (2 << 20))))

    kernel = functools.partial(_mean_pool_kernel, inv_scale=inv_scale, t_rem=t_rem)

    out = pl.pallas_call(
        kernel,
        out_shape=jax.ShapeDtypeStruct((n_splits, B, ck), out_dtype),
        grid_spec=pltpu.PrefetchScalarGridSpec(
            num_scalar_prefetch=0,
            grid=(n_splits, nb, nt),
            in_specs=[pl.BlockSpec((tb, tt, ck),
                                   lambda s, b, t, _nt=nt: (b, s * _nt + t, 0))],
            # Same output block across the T axis -> stays resident in VMEM.
            out_specs=pl.BlockSpec((1, tb, ck), lambda s, b, t: (s, b, 0)),
            scratch_shapes=[pltpu.VMEM((tb, ck), jnp.float32)],
        ),
        compiler_params=pltpu.CompilerParams(
            # split & batch parallel (megacore sharding), T arbitrary (reduction).
            dimension_semantics=("parallel", "parallel", "arbitrary"),
            vmem_limit_bytes=vmem_limit,
        ),
        cost_estimate=pl.CostEstimate(
            flops=int(B) * int(T) * int(C),
            transcendentals=0,
            bytes_accessed=int(B) * int(T) * int(C) * itemsize
            + n_splits * int(B) * ck * jnp.dtype(out_dtype).itemsize,
        ),
    )(x)

    if needs_epilogue:
        # Tiny op on (n_splits, B, g*C): fold the lane groups / reduction halves,
        # scale by the TRUE 1/T, cast back to the input dtype.
        sums = out.reshape(n_splits, B, groups, C).sum(axis=(0, 2))
        out = (sums * (1.0 / T)).astype(orig_dtype)
    # NOTE: extremely wide C (>~64K f32) would additionally need a C-block grid axis
    # to keep a single (tb, sub, C) slab inside VMEM; not needed for typical sizes.
    # Match torch's .squeeze() on the pooled (B, C, 1) tensor: drop all size-1 dims.
    return jnp.squeeze(out)


if __name__ == "__main__":
    key = jax.random.PRNGKey(0)

    # Small deterministic example consistent with the module: batch=2, seq=8, in_features=32.
    B, T, C = 2, 8, 32
    features = jax.random.normal(key, (B, T, C), dtype=jnp.float32)
    out = jax.block_until_ready(fcn_base_forward(features))
    ref = jnp.mean(features, axis=1)
    assert out.shape == (B, C), out.shape
    assert jnp.allclose(out, ref, atol=1e-5, rtol=1e-5), "mismatch vs reference"

    # Ragged B / T (non-multiples of the tile sizes): exercises in-kernel tail masking
    # and dropped out-of-bounds output rows (no wrapper-side padding copy).
    B2, T2, C2 = 11, 37, 32
    feats2 = jax.random.normal(jax.random.PRNGKey(1), (B2, T2, C2), dtype=jnp.float32)
    out2 = jax.block_until_ready(fcn_base_forward(feats2, target_block_bytes=8192))
    ref2 = jnp.mean(feats2, axis=1)
    assert out2.shape == (B2, C2), out2.shape
    assert jnp.allclose(out2, ref2, atol=1e-5, rtol=1e-5), "mismatch vs reference (ragged)"

    # Lane-dense grouping + forced 2-way reduction split (so the v7x path is exercised
    # on any TPU generation).
    B3, T3, C3 = 2, 1024, 32
    feats3 = jax.random.normal(jax.random.PRNGKey(2), (B3, T3, C3), dtype=jnp.float32)
    out3 = jax.block_until_ready(
        fcn_base_forward(feats3, target_block_bytes=32768, split_reduction=True))
    ref3 = jnp.mean(feats3, axis=1)
    assert out3.shape == (B3, C3), out3.shape
    assert jnp.allclose(out3, ref3, atol=1e-5, rtol=1e-5), "mismatch vs reference (split)"

    print("KERNEL_OK")
</pallas_src>

<mosaic_0001>
module attributes {stable_mosaic.version = 11 : i64} {
  func.func @_mean_pool_kernel(%arg0: i32, %arg1: i32, %arg2: i32, %arg3: memref<2x1x256xf32, #tpu.memory_space<vmem>>, %arg4: memref<1x2x256xf32, #tpu.memory_space<vmem>>, %arg5: memref<2x256xf32, #tpu.memory_space<vmem>>) attributes {dimension_semantics = [#tpu.dimension_semantics<parallel>, #tpu.dimension_semantics<parallel>, #tpu.dimension_semantics<arbitrary>], iteration_bounds = array<i64: 1, 1, 1>, scalar_prefetch = 0 : i64, scratch_operands = 1 : i64, tpu.core_type = #tpu.core_type<tc>, window_params = [{transform_indices = @transform_0, window_bounds = array<i64: 2, 1, 256>}, {transform_indices = @transform_1, window_bounds = array<i64: 1, 2, 256>}]} {
    %c0 = arith.constant 0 : index
    %c0_0 = arith.constant 0 : index
    %c0_1 = arith.constant 0 : index
    %0 = vector.load %arg3[%c0, %c0_0, %c0_1] : memref<2x1x256xf32, #tpu.memory_space<vmem>>, vector<2x1x256xf32>
    %cst = arith.constant dense<0.000000e+00> : vector<2x256xf32>
    %1 = vector.multi_reduction <add>, %0, %cst [1] : vector<2x1x256xf32> to vector<2x256xf32>
    %c0_i32 = arith.constant 0 : i32
    %2 = arith.cmpi eq, %arg2, %c0_i32 : i32
    %3 = arith.extui %2 : i1 to i32
    %c0_i32_2 = arith.constant 0 : i32
    %4 = arith.cmpi ne, %3, %c0_i32_2 : i32
    scf.if %4 {
      %c0_7 = arith.constant 0 : index
      %c0_8 = arith.constant 0 : index
      %11 = vector.load %arg5[%c0_7, %c0_8] : memref<2x256xf32, #tpu.memory_space<vmem>>, vector<2x256xf32>
      tpu.vector_store %arg5[%c0_7, %c0_8], %1 {strides = array<i32>} : memref<2x256xf32, #tpu.memory_space<vmem>>, vector<2x256xf32>,
    } else {
    }
    %c0_i32_3 = arith.constant 0 : i32
    %5 = arith.cmpi sgt, %arg2, %c0_i32_3 : i32
    %6 = arith.extui %5 : i1 to i32
    %c0_i32_4 = arith.constant 0 : i32
    %7 = arith.cmpi ne, %6, %c0_i32_4 : i32
    scf.if %7 {
      %c0_7 = arith.constant 0 : index
      %c0_8 = arith.constant 0 : index
      %11 = vector.load %arg5[%c0_7, %c0_8] : memref<2x256xf32, #tpu.memory_space<vmem>>, vector<2x256xf32>
      %12 = arith.addf %11, %1 : vector<2x256xf32>
      %c0_9 = arith.constant 0 : index
      %c0_10 = arith.constant 0 : index
      %13 = vector.load %arg5[%c0_9, %c0_10] : memref<2x256xf32, #tpu.memory_space<vmem>>, vector<2x256xf32>
      tpu.vector_store %arg5[%c0_9, %c0_10], %12 {strides = array<i32>} : memref<2x256xf32, #tpu.memory_space<vmem>>, vector<2x256xf32>,
    } else {
    }
    %c0_i32_5 = arith.constant 0 : i32
    %8 = arith.cmpi eq, %arg2, %c0_i32_5 : i32
    %9 = arith.extui %8 : i1 to i32
    %c0_i32_6 = arith.constant 0 : i32
    %10 = arith.cmpi ne, %9, %c0_i32_6 : i32
    scf.if %10 {
      %c0_7 = arith.constant 0 : index
      %c0_8 = arith.constant 0 : index
      %11 = vector.load %arg5[%c0_7, %c0_8] : memref<2x256xf32, #tpu.memory_space<vmem>>, vector<2x256xf32>
      %12 = vector.shape_cast %11 : vector<2x256xf32> to vector<1x2x256xf32>
      %c0_9 = arith.constant 0 : index
      %c0_10 = arith.constant 0 : index
      %c0_11 = arith.constant 0 : index
      %13 = vector.load %arg4[%c0_9, %c0_10, %c0_11] : memref<1x2x256xf32, #tpu.memory_space<vmem>>, vector<1x2x256xf32>
      tpu.vector_store %arg4[%c0_9, %c0_10, %c0_11], %12 {strides = array<i32>} : memref<1x2x256xf32, #tpu.memory_space<vmem>>, vector<1x2x256xf32>,
    } else {
    }
    return
  }
  func.func @transform_0(%arg0: i32, %arg1: i32, %arg2: i32) -> (i32, i32, i32) {
    %c1_i32 = arith.constant 1 : i32
    %0 = arith.muli %arg0, %c1_i32 : i32
    %1 = arith.addi %0, %arg2 : i32
    %c0_i32 = arith.constant 0 : i32
    %c0_i32_0 = arith.constant 0 : i32
    return %arg1, %1, %c0_i32 : i32, i32, i32
  }
  func.func @transform_1(%arg0: i32, %arg1: i32, %arg2: i32) -> (i32, i32, i32) {
    %c0_i32 = arith.constant 0 : i32
    %c0_i32_0 = arith.constant 0 : i32
    return %arg0, %arg1, %c0_i32 : i32, i32, i32
  }
}

</mosaic_0001>

<bundles_post_ra>
// kernel: fcn_base_forward.1
= control target key start
LH: loop header
LB: loop body
LE: loop exit
PB: predicated region body
PF: predicated region fallthrough
CT: control target
= control target key end

     0   :  { %s98_s0 = inlined_call_operand.vmem [shape: f32[2,1,256], index: 0, kind: input, shape index: {}]   ;;  %s99_s1 = inlined_call_operand.vmem [shape: f32[1,2,256], index: 1, kind: output, shape index: {}]  }
   0x1   :  { %v25_v0 = vld [vmem:[%s98_s0] sm:$0x3]  ;;  %v26_v1 = vld [vmem:[%s98_s0 + $0x2] sm:$0x3] }
   0x2   :  { %v35_v2 = vcombine.low %v25_v0, %v26_v1 }
   0x4   :  { %78 = vst.sshfl [vmem:[#allocation2] sm:$0x33 pattern:$0x75316420] %v35_v2 }
   0xb   :  { %v66_v3 = vld [vmem:[#allocation2] sm:$0xf] }
   0xc   :  { %67 = vst [vmem:[%s99_s1] sm:$0xf] %v66_v3 }

</bundles_post_ra>
